<compile_context>
chip_gen: v7x
topology: tpu7x:2x2x1
jax: 0.10.0
libtpu: 0.0.40
codegen_flags: <defaults>
</compile_context>

<pallas_src>
import functools

import jax
import jax.numpy as jnp
from jax.experimental import pallas as pl
from jax.experimental.pallas import tpu as pltpu

LANES = 128
SUBLANES = 8
MAX_TILE_ROWS = 1024   # (1024, 128) f32 = 512 KiB per input per pipeline buffer


def _iou_partial_kernel(x_ref, y_ref, inter_ref, total_ref, *,
                        block_rows, valid_rows, last_tile_row0, mask_tail):
    """One tile: write (8, 128) partial sums of x*y and x+y."""
    acc_i = jnp.zeros((SUBLANES, LANES), jnp.float32)
    acc_t = jnp.zeros((SUBLANES, LANES), jnp.float32)

    if mask_tail:
        row_base = pl.program_id(0) * block_rows

    # Unrolled walk over the tile in (8, 128) vreg chunks read straight from
    # the VMEM-resident input blocks; keeps live values tiny and avoids any
    # per-step cross-lane reduction or serialized scalar carry.
    for r0 in range(0, block_rows, SUBLANES):
        xs = x_ref[r0:r0 + SUBLANES, :].astype(jnp.float32)
        ys = y_ref[r0:r0 + SUBLANES, :].astype(jnp.float32)

        # Only the statically-known tail chunks of the last tile can read
        # out-of-bounds rows (unspecified values) -> mask them to zero.
        if mask_tail and (last_tile_row0 + r0 + SUBLANES > valid_rows):
            rid = row_base + r0 + jax.lax.broadcasted_iota(
                jnp.int32, (SUBLANES, LANES), 0)
            keep = rid < valid_rows
            xs = jnp.where(keep, xs, 0.0)
            ys = jnp.where(keep, ys, 0.0)

        acc_i = acc_i + xs * ys
        acc_t = acc_t + xs + ys

    inter_ref[0] = acc_i
    total_ref[0] = acc_t


def iou_loss(inputs, targets, smooth=1.0):
    """Pallas equivalent of IoULoss.forward (returns a scalar f32)."""
    x = jnp.ravel(inputs)     # keep the native dtype; cast inside the kernel
    y = jnp.ravel(targets)
    n = x.shape[0]

    rows = max(1, -(-n // LANES))              # rows of 128 lanes
    if rows <= MAX_TILE_ROWS:
        # Small input: pad rows up to a sublane multiple (cheap) -> one tile.
        rows_pad = -(-rows // SUBLANES) * SUBLANES
        block_rows = rows_pad
        mask_tail = False
    else:
        rows_pad = rows
        block_rows = MAX_TILE_ROWS
        mask_tail = (rows_pad % block_rows) != 0

    n_pad = rows_pad * LANES
    if n_pad != n:                             # zero pad: no-op for both sums
        x = jnp.pad(x, (0, n_pad - n))
        y = jnp.pad(y, (0, n_pad - n))
    x2d = x.reshape(rows_pad, LANES)
    y2d = y.reshape(rows_pad, LANES)

    num_tiles = -(-rows_pad // block_rows)

    kernel = functools.partial(
        _iou_partial_kernel,
        block_rows=block_rows,
        valid_rows=rows_pad,
        last_tile_row0=(num_tiles - 1) * block_rows,
        mask_tail=mask_tail,
    )

    partial_shape = jax.ShapeDtypeStruct((num_tiles, SUBLANES, LANES),
                                         jnp.float32)
    in_spec = pl.BlockSpec((block_rows, LANES), lambda i: (i, 0))
    out_spec = pl.BlockSpec((1, SUBLANES, LANES), lambda i: (i, 0, 0))

    inter_p, total_p = pl.pallas_call(
        kernel,
        out_shape=(partial_shape, partial_shape),
        grid_spec=pltpu.PrefetchScalarGridSpec(
            num_scalar_prefetch=0,
            grid=(num_tiles,),
            in_specs=[in_spec, in_spec],
            out_specs=[out_spec, out_spec],
        ),
        compiler_params=pltpu.CompilerParams(
            # Every tile writes its own output block -> fully independent;
            # on v7x this lets the grid be sharded across both TensorCores.
            dimension_semantics=("parallel",),
        ),
    )(x2d, y2d)

    # Tiny final combine (num_tiles*8*128 f32 partials) + IoU scalar math.
    intersection = jnp.sum(inter_p)
    total = jnp.sum(total_p)
    union = total - intersection
    smooth = jnp.float32(smooth)
    iou = (intersection + smooth) / (union + smooth)
    return jnp.float32(1.0) - iou


def _reference(inputs, targets, smooth=1.0):
    x = jnp.ravel(inputs).astype(jnp.float32)
    y = jnp.ravel(targets).astype(jnp.float32)
    intersection = jnp.sum(x * y)
    total = jnp.sum(x + y)
    union = total - intersection
    return 1.0 - (intersection + smooth) / (union + smooth)


if __name__ == "__main__":
    key = jax.random.PRNGKey(0)
    k1, k2, k3, k4 = jax.random.split(key, 4)

    # Main check: segmentation-style NCHW inputs (B=2, C=4, H=W=16), f32.
    shape = (2, 4, 16, 16)
    inputs = jax.nn.sigmoid(jax.random.normal(k1, shape, dtype=jnp.float32))
    targets = (jax.random.uniform(k2, shape) > 0.5).astype(jnp.float32)

    loss = jax.block_until_ready(iou_loss(inputs, targets, smooth=1.0))
    ref = jax.block_until_ready(_reference(inputs, targets, smooth=1.0))
    assert jnp.allclose(loss, ref, atol=1e-5, rtol=1e-5), (loss, ref)

    # Secondary check: ragged shape exercising the multi-tile grid, the lane
    # padding and the in-kernel tail mask, with native bf16 inputs.
    shape2 = (3, 3, 135, 135)
    inputs2 = jax.nn.sigmoid(
        jax.random.normal(k3, shape2, dtype=jnp.float32)).astype(jnp.bfloat16)
    targets2 = (jax.random.uniform(k4, shape2) > 0.5).astype(jnp.bfloat16)

    loss2 = jax.block_until_ready(iou_loss(inputs2, targets2, smooth=1.0))
    ref2 = jax.block_until_ready(_reference(inputs2, targets2, smooth=1.0))
    assert jnp.allclose(loss2, ref2, atol=1e-4, rtol=1e-4), (loss2, ref2)

    print("KERNEL_OK")
</pallas_src>

<mosaic_0001>
module attributes {stable_mosaic.version = 11 : i64} {
  func.func @_iou_partial_kernel(%arg0: i32, %arg1: memref<16x128xf32, #tpu.memory_space<vmem>>, %arg2: memref<16x128xf32, #tpu.memory_space<vmem>>, %arg3: memref<1x8x128xf32, #tpu.memory_space<vmem>>, %arg4: memref<1x8x128xf32, #tpu.memory_space<vmem>>) attributes {dimension_semantics = [#tpu.dimension_semantics<parallel>], iteration_bounds = array<i64: 1>, scalar_prefetch = 0 : i64, scratch_operands = 0 : i64, tpu.core_type = #tpu.core_type<tc>, window_params = [{transform_indices = @transform_0, window_bounds = array<i64: 16, 128>}, {transform_indices = @transform_1, window_bounds = array<i64: 16, 128>}, {transform_indices = @transform_2, window_bounds = array<i64: 1, 8, 128>}, {transform_indices = @transform_3, window_bounds = array<i64: 1, 8, 128>}]} {
    %cst = arith.constant 0.000000e+00 : f32
    %0 = vector.broadcast %cst : f32 to vector<8x128xf32>
    %cst_0 = arith.constant 0.000000e+00 : f32
    %1 = vector.broadcast %cst_0 : f32 to vector<8x128xf32>
    %c0 = arith.constant 0 : index
    %c0_1 = arith.constant 0 : index
    %2 = vector.load %arg1[%c0, %c0_1] : memref<16x128xf32, #tpu.memory_space<vmem>>, vector<8x128xf32>
    %c0_2 = arith.constant 0 : index
    %c0_3 = arith.constant 0 : index
    %3 = vector.load %arg2[%c0_2, %c0_3] : memref<16x128xf32, #tpu.memory_space<vmem>>, vector<8x128xf32>
    %4 = arith.mulf %2, %3 : vector<8x128xf32>
    %5 = arith.addf %0, %4 : vector<8x128xf32>
    %6 = arith.addf %1, %2 : vector<8x128xf32>
    %7 = arith.addf %6, %3 : vector<8x128xf32>
    %c8 = arith.constant 8 : index
    %c0_4 = arith.constant 0 : index
    %8 = vector.load %arg1[%c8, %c0_4] : memref<16x128xf32, #tpu.memory_space<vmem>>, vector<8x128xf32>
    %c8_5 = arith.constant 8 : index
    %c0_6 = arith.constant 0 : index
    %9 = vector.load %arg2[%c8_5, %c0_6] : memref<16x128xf32, #tpu.memory_space<vmem>>, vector<8x128xf32>
    %10 = arith.mulf %8, %9 : vector<8x128xf32>
    %11 = arith.addf %5, %10 : vector<8x128xf32>
    %12 = arith.addf %7, %8 : vector<8x128xf32>
    %13 = arith.addf %12, %9 : vector<8x128xf32>
    %c0_7 = arith.constant 0 : index
    %c0_8 = arith.constant 0 : index
    %c0_9 = arith.constant 0 : index
    %14 = vector.load %arg3[%c0_7, %c0_8, %c0_9] : memref<1x8x128xf32, #tpu.memory_space<vmem>>, vector<1x8x128xf32>
    %15 = vector.shape_cast %14 : vector<1x8x128xf32> to vector<8x128xf32>
    %16 = vector.shape_cast %11 : vector<8x128xf32> to vector<1x8x128xf32>
    tpu.vector_store %arg3[%c0_7, %c0_8, %c0_9], %16 {strides = array<i32>} : memref<1x8x128xf32, #tpu.memory_space<vmem>>, vector<1x8x128xf32>,
    %c0_10 = arith.constant 0 : index
    %c0_11 = arith.constant 0 : index
    %c0_12 = arith.constant 0 : index
    %17 = vector.load %arg4[%c0_10, %c0_11, %c0_12] : memref<1x8x128xf32, #tpu.memory_space<vmem>>, vector<1x8x128xf32>
    %18 = vector.shape_cast %17 : vector<1x8x128xf32> to vector<8x128xf32>
    %19 = vector.shape_cast %13 : vector<8x128xf32> to vector<1x8x128xf32>
    tpu.vector_store %arg4[%c0_10, %c0_11, %c0_12], %19 {strides = array<i32>} : memref<1x8x128xf32, #tpu.memory_space<vmem>>, vector<1x8x128xf32>,
    return
  }
  func.func @transform_0(%arg0: i32) -> (i32, i32) {
    %c0_i32 = arith.constant 0 : i32
    %c0_i32_0 = arith.constant 0 : i32
    return %arg0, %c0_i32 : i32, i32
  }
  func.func @transform_1(%arg0: i32) -> (i32, i32) {
    %c0_i32 = arith.constant 0 : i32
    %c0_i32_0 = arith.constant 0 : i32
    return %arg0, %c0_i32 : i32, i32
  }
  func.func @transform_2(%arg0: i32) -> (i32, i32, i32) {
    %c0_i32 = arith.constant 0 : i32
    %c0_i32_0 = arith.constant 0 : i32
    %c0_i32_1 = arith.constant 0 : i32
    return %arg0, %c0_i32, %c0_i32_0 : i32, i32, i32
  }
  func.func @transform_3(%arg0: i32) -> (i32, i32, i32) {
    %c0_i32 = arith.constant 0 : i32
    %c0_i32_0 = arith.constant 0 : i32
    %c0_i32_1 = arith.constant 0 : i32
    return %arg0, %c0_i32, %c0_i32_0 : i32, i32, i32
  }
}

</mosaic_0001>

<bundles_post_ra>
// kernel: tpu_custom_call.1
= control target key start
LH: loop header
LB: loop body
LE: loop exit
PB: predicated region body
PF: predicated region fallthrough
CT: control target
= control target key end

     0   :  { %9 = vsyncpa [#allocation3], 0  ;;  %s263_s0 = inlined_call_operand.hbm [shape: f32[16,128], index: 0, kind: input, shape index: {}]   ;;  %s264_s1 = inlined_call_operand.hbm [shape: f32[16,128], index: 1, kind: input, shape index: {}]   ;;  %s265_s2 = inlined_call_operand.hbm [shape: f32[1,8,128], index: 2, kind: output, shape index: {0}]   ;;  %s266_s3 = inlined_call_operand.hbm [shape: f32[1,8,128], index: 3, kind: output, shape index: {1}]  }
   0x1   :  { %10 = vsyncpa [#allocation6], 0 }
   0x2   :  { %11 = vsyncpa [#allocation4], 0 }
   0x3   :  { %12 = vsyncpa [#allocation9], 0  ;;  %s189_s12 = smov [#allocation2]   ;;  %s93_s16 = scalar_lea.hbm %s263_s0, 256 }
   0x4   :  { %s18_s13 = sshll.u32 %s189_s12, 4  ;;  %p94_p0 = scmp.ne.s32.totalorder %s263_s0, %s93_s16  ;;  %s19_s13 = int_to_ptr.vmem [resolvable:$true] %s18_s13 }
   0x5   :  { %p97_p1 = scmp.lt.u32.totalorder %s93_s16, %s263_s0 }
   0x7   :  { %p99_p2 = pnand %p97_p1, %p94_p0 }
   0x9   :  { %102 = shalt.err (!%p99_p2)
}
   0xa   :  { %s103_s21 = scalar_lea.vmem %s19_s13, 256  ;;  %p108_p4 = scmp.lt.s32.totalorder %s19_s13, %s19_s13 }
   0xb   :  { %p104_p3 = scmp.ne.s32.totalorder %s19_s13, %s103_s21  ;;  %p109_p5 = scmp.lt.s32.totalorder %s103_s21, %s103_s21 }
   0xd   :  { %p110_p6 = por %p109_p5, %p108_p4 }
   0xf   :  { %p111_p7 = pnand %p110_p6, %p104_p3 }
  0x11   :  { %114 = shalt.err (!%p111_p7)
}
  0x12   :  { %s190_s22 = smov 128   ;;  %s191_s23 = smov 8  }
  0x13   :  { %24 = dma.hbm_to_vmem [thread:$0]  %s263_s0, 256, %s19_s13, [#allocation3], %s190_s22, %s190_s22, %s191_s23  }
  0x14   :  { %s192_s26 = smov [#allocation5]   ;;  %s115_s30 = scalar_lea.hbm %s264_s1, 256 }
  0x15   :  { %s30_s27 = sshll.u32 %s192_s26, 4  ;;  %p116_p8 = scmp.ne.s32.totalorder %s264_s1, %s115_s30  ;;  %s31_s27 = int_to_ptr.vmem [resolvable:$true] %s30_s27 }
  0x16   :  { %p119_p9 = scmp.lt.u32.totalorder %s115_s30, %s264_s1 }
  0x18   :  { %p121_p10 = pnand %p119_p9, %p116_p8 }
  0x1a   :  { %124 = shalt.err (!%p121_p10)
}
  0x1b   :  { %s125_s8 = scalar_lea.vmem %s31_s27, 256  ;;  %p130_p12 = scmp.lt.s32.totalorder %s31_s27, %s31_s27 }
  0x1c   :  { %p126_p11 = scmp.ne.s32.totalorder %s31_s27, %s125_s8  ;;  %p131_p13 = scmp.lt.s32.totalorder %s125_s8, %s125_s8 }
  0x1e   :  { %p132_p0 = por %p131_p13, %p130_p12 }
  0x20   :  { %p133_p1 = pnand %p132_p0, %p126_p11 }
  0x22   :  { %136 = shalt.err (!%p133_p1)
}
  0x23   :  { %36 = dma.hbm_to_vmem [thread:$0]  %s264_s1, 256, %s31_s27, [#allocation6], %s190_s22, %s190_s22, %s191_s23  }
  0x24   :  { %181 = dma.done.wait [#allocation3], 256  }
  0x25   :  { %182 = vsyncadd [#allocation3], 4294967040 }
  0x26   :  { %183 = dma.done.wait [#allocation6], 256  }
  0x27   :  { %184 = vsyncadd [#allocation6], 4294967040  ;;  %v43_v0 = vld [vmem:[#allocation2] sm:$0xff]  ;;  %v44_v1 = vld [vmem:[#allocation5] sm:$0xff]  ;;  %s193_s10 = smov [#allocation7]   ;;  %s194_s12 = smov [#allocation8]  }
  0x28   :  { %v49_v2 = vld [vmem:[#allocation2 + $0x8] sm:$0xff]  ;;  %v45_v3 = vmul.f32 %v44_v1, %v43_v0  ;;  %v50_v4 = vld [vmem:[#allocation5 + $0x8] sm:$0xff]  ;;  %v48_v5 = vadd.f32 %v44_v1, %v43_v0  ;;  %s63_s11 = sshll.u32 %s193_s10, 4  ;;  %s73_s13 = sshll.u32 %s194_s12, 4  ;;  %s64_s11 = int_to_ptr.vmem [resolvable:$true] %s63_s11  ;;  %s74_s13 = int_to_ptr.vmem [resolvable:$true] %s73_s13 }
  0x29   :  { %v51_v6 = vmul.f32 %v50_v4, %v49_v2  ;;  %s137_s1 = scalar_lea.vmem %s64_s11, 128  ;;  %p142_p3 = scmp.lt.s32.totalorder %s64_s11, %s64_s11 }
  0x2a   :  { %v53_v7 = vadd.f32 %v49_v2, %v48_v5  ;;  %p138_p2 = scmp.ne.s32.totalorder %s64_s11, %s137_s1  ;;  %p143_p4 = scmp.lt.s32.totalorder %s137_s1, %s137_s1 }
  0x2b   :  { %v52_v8 = vadd.f32 %v51_v6, %v45_v3 }
  0x2c   :  { %v54_v9 = vadd.f32 %v53_v7, %v50_v4  ;;  %p144_p5 = por %p143_p4, %p142_p3 }
  0x2d   :  { %55 = vst [vmem:[#allocation7] sm:$0xff] %v52_v8 }
  0x2e   :  { %56 = vst [vmem:[#allocation8] sm:$0xff] %v54_v9  ;;  %p145_p6 = pnand %p144_p5, %p138_p2 }
  0x30   :  { %148 = shalt.err (!%p145_p6)
}
  0x31   :  { %s149_s16 = scalar_lea.hbm %s265_s2, 128 }
  0x32   :  { %p150_p7 = scmp.ne.s32.totalorder %s265_s2, %s149_s16  ;;  %p153_p8 = scmp.lt.u32.totalorder %s149_s16, %s265_s2 }
  0x34   :  { %p155_p9 = pnand %p153_p8, %p150_p7 }
  0x36   :  { %158 = shalt.err (!%p155_p9)
}
  0x37   :  { %66 = dma.vmem_to_hbm [thread:$0]  %s64_s11, 128, %s265_s2, [#allocation4]  }
  0x38   :  { %s159_s23 = scalar_lea.vmem %s74_s13, 128  ;;  %p164_p11 = scmp.lt.s32.totalorder %s74_s13, %s74_s13 }
  0x39   :  { %p160_p10 = scmp.ne.s32.totalorder %s74_s13, %s159_s23  ;;  %p165_p12 = scmp.lt.s32.totalorder %s159_s23, %s159_s23 }
  0x3b   :  { %p166_p13 = por %p165_p12, %p164_p11 }
  0x3d   :  { %p167_p0 = pnand %p166_p13, %p160_p10 }
  0x3f   :  { %170 = shalt.err (!%p167_p0)
}
  0x40   :  { %s171_s26 = scalar_lea.hbm %s266_s3, 128 }
  0x41   :  { %p172_p1 = scmp.ne.s32.totalorder %s266_s3, %s171_s26  ;;  %p175_p2 = scmp.lt.u32.totalorder %s171_s26, %s266_s3 }
  0x43   :  { %p177_p3 = pnand %p175_p2, %p172_p1 }
  0x45   :  { %180 = shalt.err (!%p177_p3)
}
  0x46   :  { %76 = dma.vmem_to_hbm [thread:$0]  %s74_s13, 128, %s266_s3, [#allocation9]  }
  0x47   :  { %185 = dma.done.wait [#allocation4], 128  }
  0x48   :  { %186 = vsyncadd [#allocation4], 4294967168 }
  0x49   :  { %187 = dma.done.wait [#allocation9], 128  }
  0x4a   :  { %188 = vsyncadd [#allocation9], 4294967168 }
  0x4b   :  { %83 = vsyncpa [#allocation3], 1 }
  0x4c   :  { %84 = vsyncpa [#allocation6], 1 }
  0x4d   :  { %85 = vsyncpa [#allocation4], 1 }
  0x4e   :  { %86 = vsyncpa [#allocation9], 1 }

</bundles_post_ra>
